<compile_context>
chip_gen: v7x
topology: tpu7x:2x2x1
jax: 0.10.0
libtpu: 0.0.40
codegen_flags: <defaults>
</compile_context>

<pallas_src>
import jax
import jax.numpy as jnp
from jax.experimental import pallas as pl
from jax.experimental.pallas import tpu as pltpu

_VP_SCALE = 1.7133749   # exact constant from the PyTorch module
_LANES = 1024           # lane (last) dim of the 2D working view; multiple of 128


def _vprelu6_kernel(x_ref, o_ref):
    # clamp(x, 0, 6) * scale.  Computed in f32 and cast at the store; for f32
    # inputs this is exact, for bf16/f16 it may differ from native-dtype
    # PyTorch by ~1 ulp (kernel is HBM-bound, the casts are free VPU work).
    y = jnp.clip(x_ref[...].astype(jnp.float32), 0.0, 6.0) * _VP_SCALE
    o_ref[...] = y.astype(o_ref.dtype)


def _target_block_bytes() -> int:
    """~4 MiB blocks on v6e/v7x (32 MiB default scoped VMEM), ~2 MiB on v5e."""
    try:
        kind = jax.devices()[0].device_kind.lower()
    except Exception:  # pragma: no cover - be conservative if query fails
        kind = ""
    return (4 << 20) if ("v6" in kind or "v7" in kind) else (2 << 20)


def _pick_row_tile(rows: int, itemsize: int) -> int:
    """Rows per block: sublane-packed, VMEM-safe, and >=2 blocks when possible."""
    pack = max(8, 32 // max(itemsize, 1))          # 8 f32 / 16 bf16 / 32 int8
    max_tile = max(pack,
                   (_target_block_bytes() // (_LANES * itemsize)) // pack * pack)
    if rows > max_tile:
        return max_tile                             # grid >= 2 via cdiv
    if rows >= 2 * pack:
        # Split medium inputs into >=2 blocks so both v7x TensorCores get work.
        half = (((rows + 1) // 2) + pack - 1) // pack * pack
        if half >= rows:                            # safety (never hit in practice)
            half = max(pack, half - pack)
        return half
    return rows                                     # single block == full extent


def _vprelu6_2d(x2d: jax.Array, row_tile: int) -> jax.Array:
    rows, lanes = x2d.shape
    return pl.pallas_call(
        _vprelu6_kernel,
        out_shape=jax.ShapeDtypeStruct((rows, lanes), x2d.dtype),
        grid=(pl.cdiv(rows, row_tile),),            # partial last block is masked
        in_specs=[pl.BlockSpec((row_tile, lanes), lambda i: (i, 0))],
        out_specs=pl.BlockSpec((row_tile, lanes), lambda i: (i, 0)),
        compiler_params=pltpu.CompilerParams(
            dimension_semantics=("parallel",),
        ),
    )(x2d)


@jax.jit
def vprelu6(x: jax.Array) -> jax.Array:
    """Variance-preserving ReLU6, elementwise.  Accepts any rank (NCHW typical)."""
    orig_shape = x.shape
    total = x.size
    if total == 0:
        return x
    itemsize = jnp.dtype(x.dtype).itemsize

    # Tiny inputs: one block equal to the full (1, total) view.
    if total < _LANES:
        return _vprelu6_2d(x.reshape(1, total), 1).reshape(orig_shape)

    bulk_rows = total // _LANES
    row_tile = _pick_row_tile(bulk_rows, itemsize)

    if total % _LANES == 0:
        # Pure bitcast reshape — no padding, no extra HBM passes.
        x2d = x.reshape(bulk_rows, _LANES)
        return _vprelu6_2d(x2d, row_tile).reshape(orig_shape)

    # Ragged case: run the lane-dense kernel on the divisible bulk and handle
    # the <1024-element tail with plain jnp (negligible), instead of padding
    # and re-slicing the whole tensor (which costs full-array HBM passes).
    flat = x.reshape(-1)
    bulk = flat[: bulk_rows * _LANES].reshape(bulk_rows, _LANES)
    tail = flat[bulk_rows * _LANES:]
    out_bulk = _vprelu6_2d(bulk, row_tile).reshape(-1)
    out_tail = (jnp.clip(tail.astype(jnp.float32), 0.0, 6.0)
                * _VP_SCALE).astype(x.dtype)
    return jnp.concatenate([out_bulk, out_tail]).reshape(orig_shape)


def _ref(x):
    return (jnp.clip(x.astype(jnp.float32), 0.0, 6.0) * _VP_SCALE).astype(x.dtype)


if __name__ == "__main__":
    key = jax.random.PRNGKey(0)
    k0, k1, k2 = jax.random.split(key, 3)

    # Main check: small NCHW activation (2048 elements, divisible path).
    x = jax.random.normal(k0, (2, 4, 16, 16), dtype=jnp.float32) * 4.0
    y = jax.block_until_ready(vprelu6(x))
    assert y.shape == x.shape and y.dtype == x.dtype
    assert jnp.allclose(y, _ref(x), atol=1e-6, rtol=1e-6)

    # Ragged path (bulk + <1024-element tail).
    xr = jax.random.normal(k1, (3, 5, 7, 11), dtype=jnp.float32) * 4.0
    yr = jax.block_until_ready(vprelu6(xr))
    assert jnp.allclose(yr, _ref(xr), atol=1e-6, rtol=1e-6)

    # Tiny-input path (single block).
    xt = jax.random.normal(k2, (4, 7), dtype=jnp.float32) * 4.0
    yt = jax.block_until_ready(vprelu6(xt))
    assert jnp.allclose(yt, _ref(xt), atol=1e-6, rtol=1e-6)

    print("KERNEL_OK")
</pallas_src>

<mosaic_0001>
module attributes {stable_mosaic.version = 11 : i64} {
  func.func @_vprelu6_kernel(%arg0: i32, %arg1: memref<2x1024xf32, #tpu.memory_space<vmem>>, %arg2: memref<2x1024xf32, #tpu.memory_space<vmem>>) attributes {dimension_semantics = [#tpu.dimension_semantics<parallel>], iteration_bounds = array<i64: 1>, scalar_prefetch = 0 : i64, scratch_operands = 0 : i64, tpu.core_type = #tpu.core_type<tc>, window_params = [{transform_indices = @transform_0, window_bounds = array<i64: 2, 1024>}, {transform_indices = @transform_1, window_bounds = array<i64: 2, 1024>}]} {
    %c0 = arith.constant 0 : index
    %c0_0 = arith.constant 0 : index
    %0 = vector.load %arg1[%c0, %c0_0] : memref<2x1024xf32, #tpu.memory_space<vmem>>, vector<2x1024xf32>
    %cst = arith.constant 0.000000e+00 : f32
    %cst_1 = arith.constant 6.000000e+00 : f32
    %1 = vector.broadcast %cst : f32 to vector<2x1024xf32>
    %2 = arith.maximumf %1, %0 : vector<2x1024xf32>
    %3 = vector.broadcast %cst_1 : f32 to vector<2x1024xf32>
    %4 = arith.minimumf %3, %2 : vector<2x1024xf32>
    %cst_2 = arith.constant 1.71337485 : f32
    %5 = vector.broadcast %cst_2 : f32 to vector<2x1024xf32>
    %6 = arith.mulf %4, %5 : vector<2x1024xf32>
    %c0_3 = arith.constant 0 : index
    %c0_4 = arith.constant 0 : index
    %7 = vector.load %arg2[%c0_3, %c0_4] : memref<2x1024xf32, #tpu.memory_space<vmem>>, vector<2x1024xf32>
    tpu.vector_store %arg2[%c0_3, %c0_4], %6 {strides = array<i32>} : memref<2x1024xf32, #tpu.memory_space<vmem>>, vector<2x1024xf32>,
    return
  }
  func.func @transform_0(%arg0: i32) -> (i32, i32) {
    %c0_i32 = arith.constant 0 : i32
    %c0_i32_0 = arith.constant 0 : i32
    return %arg0, %c0_i32 : i32, i32
  }
  func.func @transform_1(%arg0: i32) -> (i32, i32) {
    %c0_i32 = arith.constant 0 : i32
    %c0_i32_0 = arith.constant 0 : i32
    return %arg0, %c0_i32 : i32, i32
  }
}

</mosaic_0001>

<bundles_post_ra>
// kernel: vprelu6.1
= control target key start
LH: loop header
LB: loop body
LE: loop exit
PB: predicated region body
PF: predicated region fallthrough
CT: control target
= control target key end

     0   :  { %s44_s0 = inlined_call_operand.vmem [shape: f32[2,1024], index: 0, kind: input, shape index: {}]   ;;  %s45_s1 = inlined_call_operand.vmem [shape: f32[2,1024], index: 1, kind: output, shape index: {}]  }
   0x1   :  { %v8_v0 = vld [vmem:[%s44_s0] sm:$0xff]  ;;  %v9_v1 = vld [vmem:[%s44_s0 + $0x8] sm:$0xff] }
   0x2   :  { %v10_v2 = vmax.f32 %v8_v0, 0.0  ;;  %v11_v3 = vmax.f32 %v9_v1, 0.0 }
   0x4   :  { %v12_v4 = vmin.f32 %v10_v2, 6.0  ;;  %v13_v5 = vmin.f32 %v11_v3, 6.0 }
   0x6   :  { %v14_v6 = vmul.f32 1.7133749, %v12_v4  ;;  %v15_v7 = vmul.f32 1.7133749, %v13_v5 }
   0x8   :  { %16 = vst [vmem:[%s45_s1] sm:$0xff] %v14_v6  ;;  %17 = vst [vmem:[%s45_s1 + $0x8] sm:$0xff] %v15_v7 }

</bundles_post_ra>
